<compile_context>
chip_gen: v7x
topology: tpu7x:2x2x1
jax: 0.10.0
libtpu: 0.0.40
codegen_flags: <defaults>
</compile_context>

<pallas_src>
import jax
import jax.numpy as jnp
from jax.experimental import pallas as pl
from jax.experimental.pallas import tpu as pltpu


def _round_up(n: int, m: int) -> int:
    return ((n + m - 1) // m) * m


# --------------------------------------------------------------------------
# Kernels
# --------------------------------------------------------------------------

def _readout_kernel_fused(x_ref, wt_ref, b_ref, o_ref):
    """K fits in one tile: single MXU matmul, bias folded into the only write.

    x_ref  : (tb, Fp)  input-rows tile (streamed once over the whole run)
    wt_ref : (Fp, tt)  pre-transposed weight tile (VMEM-resident, const index)
    b_ref  : (1, tt)   bias row (f32)
    o_ref  : (tb, tt)  output tile
    """
    acc = jnp.dot(x_ref[...], wt_ref[...], preferred_element_type=jnp.float32)
    o_ref[...] = (acc + b_ref[...]).astype(o_ref.dtype)


def _readout_kernel_ktiled(x_ref, wt_ref, b_ref, o_ref, acc_ref):
    """Fallback: accumulate over the feature (K) grid axis in f32 scratch."""
    k = pl.program_id(2)

    @pl.when(k == 0)
    def _init():
        # Fold bias into the accumulator init (saves a separate add).
        acc_ref[...] = jnp.broadcast_to(b_ref[...], acc_ref.shape)

    acc_ref[...] += jnp.dot(x_ref[...], wt_ref[...],
                            preferred_element_type=jnp.float32)

    @pl.when(k == pl.num_programs(2) - 1)
    def _finalize():
        o_ref[...] = acc_ref[...].astype(o_ref.dtype)


# --------------------------------------------------------------------------
# Wrapper
# --------------------------------------------------------------------------

def readout_forward(x, weight, bias, *,
                    compute_dtype=jnp.bfloat16,
                    vmem_budget_bytes=24 * 1024 * 1024,
                    vmem_limit_bytes=48 * 1024 * 1024,
                    max_tile_batch=2048,
                    tile_features_fallback=2048,
                    tile_targets_fallback=512):
    """Pallas equivalent of torch.nn.functional.linear(x, weight, bias).

    compute_dtype: dtype for the x / W HBM streams (default bf16, MXU-native
    on v5e/v6e/v7x; accumulation is always f32). None keeps the input dtype.
    vmem_budget_bytes: buffer budget used for tile sizing (kept conservative
    so the same config fits v7x's 64 MiB physical VMEM with headroom).
    """
    B, F = x.shape
    T, F2 = weight.shape
    assert F == F2, "feature mismatch between x and weight"
    assert bias.shape == (T,), "bias shape mismatch"
    out_dtype = x.dtype

    if compute_dtype is not None:
        x = x.astype(compute_dtype)
        weight = weight.astype(compute_dtype)
    in_itemsize = jnp.dtype(x.dtype).itemsize
    out_itemsize = jnp.dtype(out_dtype).itemsize
    # Sub-32-bit streams pack two rows per sublane -> round batch tiles to 16.
    align_b = 16 if in_itemsize < 4 else 8

    Tp0 = _round_up(T, 128)
    Fp0 = _round_up(F, 128)

    # --- target tile: cover all targets in one lane-dense tile when small ---
    tt = Tp0 if Tp0 <= 2048 else min(_round_up(tile_targets_fallback, 128), Tp0)
    Tp = _round_up(T, tt)
    n_j = Tp // tt

    # --- feature tile: keep W^T fully VMEM-resident when it fits the budget ---
    w_full_bytes = 2 * Fp0 * tt * in_itemsize          # conservatively x2 buffers
    if w_full_bytes <= vmem_budget_bytes // 2:
        tk = Fp0
    else:
        tk = min(_round_up(tile_features_fallback, 128), Fp0)
    Fp = _round_up(F, tk)
    n_k = Fp // tk
    fused = (n_k == 1)

    # --- batch tile from the remaining VMEM budget ---
    w_bytes = 2 * tk * tt * in_itemsize
    per_row = (2 * tk * in_itemsize            # double-buffered x tile
               + 2 * tt * out_itemsize         # double-buffered out tile
               + (0 if fused else tt * 4))     # f32 accumulator scratch
    tb_budget = max(align_b, (vmem_budget_bytes - w_bytes) // per_row)
    tb = min(tb_budget, max_tile_batch, _round_up(B, align_b))
    tb = max(align_b, (tb // align_b) * align_b)

    # Make sure the "parallel" batch axis has >= 2 tiles whenever it can, so
    # both TensorCores on v7x get work (harmless on single-TC v5e/v6e).
    Bp0 = _round_up(B, align_b)
    if Bp0 > align_b:
        tb = min(tb, _round_up(pl.cdiv(Bp0, 2), align_b))
    Bp = _round_up(B, tb)
    n_i = Bp // tb

    # --- one-off layout plumbing outside the hot loop ---
    wt = weight.T                                           # (F, T)
    x_p = x if (Bp == B and Fp == F) else jnp.pad(x, ((0, Bp - B), (0, Fp - F)))
    wt_p = wt if (Fp == F and Tp == T) else jnp.pad(wt, ((0, Fp - F), (0, Tp - T)))
    b_p = bias.reshape(1, T).astype(jnp.float32)
    if Tp != T:
        b_p = jnp.pad(b_p, ((0, 0), (0, Tp - T)))

    # --- advisory cost estimate with actual re-read factors ---
    if fused:
        x_hbm = x_p.size * in_itemsize                      # x streamed once
        w_hbm = wt_p.size * in_itemsize * (1 if n_j == 1 else n_i)
    else:
        x_hbm = x_p.size * in_itemsize * n_j                # x re-read per j tile
        w_hbm = wt_p.size * in_itemsize * n_i               # W re-read per i tile
    cost = pl.CostEstimate(
        flops=2 * B * F * T,
        transcendentals=0,
        bytes_accessed=int(x_hbm + w_hbm + b_p.size * 4 + Bp * Tp * out_itemsize),
    )

    if fused:
        compiler_params = pltpu.CompilerParams(
            dimension_semantics=("parallel", "parallel"),
            vmem_limit_bytes=vmem_limit_bytes,
        )
        out_p = pl.pallas_call(
            _readout_kernel_fused,
            out_shape=jax.ShapeDtypeStruct((Bp, Tp), out_dtype),
            grid_spec=pltpu.PrefetchScalarGridSpec(
                num_scalar_prefetch=0,
                grid=(n_i, n_j),
                in_specs=[
                    pl.BlockSpec((tb, tk), lambda i, j: (i, 0)),   # x tile
                    pl.BlockSpec((tk, tt), lambda i, j: (0, j)),   # W^T (resident)
                    pl.BlockSpec((1, tt), lambda i, j: (0, j)),    # bias row
                ],
                out_specs=pl.BlockSpec((tb, tt), lambda i, j: (i, j)),
            ),
            compiler_params=compiler_params,
            cost_estimate=cost,
        )(x_p, wt_p, b_p)
    else:
        compiler_params = pltpu.CompilerParams(
            dimension_semantics=("parallel", "parallel", "arbitrary"),
            vmem_limit_bytes=vmem_limit_bytes,
        )
        out_p = pl.pallas_call(
            _readout_kernel_ktiled,
            out_shape=jax.ShapeDtypeStruct((Bp, Tp), out_dtype),
            grid_spec=pltpu.PrefetchScalarGridSpec(
                num_scalar_prefetch=0,
                grid=(n_i, n_j, n_k),
                in_specs=[
                    pl.BlockSpec((tb, tk), lambda i, j, k: (i, k)),   # x tile
                    pl.BlockSpec((tk, tt), lambda i, j, k: (k, j)),   # W^T tile
                    pl.BlockSpec((1, tt), lambda i, j, k: (0, j)),    # bias row
                ],
                out_specs=pl.BlockSpec((tb, tt), lambda i, j, k: (i, j)),
                scratch_shapes=[pltpu.VMEM((tb, tt), jnp.float32)],
            ),
            compiler_params=compiler_params,
            cost_estimate=cost,
        )(x_p, wt_p, b_p)

    return out_p[:B, :T]


# TODO(synk): fit_readout / fit_and_validate_readout (ridge regression with a
# dense linear solve) are host-side fitting utilities, not a forward-pass
# kernel; they are intentionally not translated to Pallas.


if __name__ == "__main__":
    # Readout(num_features=1000, num_targets=24) on 264 reservoir states:
    # small, but exercises padding on every axis, the fused (W^T-resident)
    # path, a 2-way batch split, and the K-tiled fallback.
    batch, num_features, num_targets = 264, 1000, 24

    key = jax.random.PRNGKey(0)
    kx, kw, kb = jax.random.split(key, 3)
    x = jax.random.normal(kx, (batch, num_features), dtype=jnp.float32)
    weight = jax.random.normal(kw, (num_targets, num_features),
                               dtype=jnp.float32) * 0.1
    bias = jax.random.normal(kb, (num_targets,), dtype=jnp.float32) * 0.1

    # Reference: same semantics as torch.nn.functional.linear.
    y_ref = jnp.dot(x, weight.T, precision=jax.lax.Precision.HIGHEST) + bias

    # Default path: bf16 x/W streams, f32 accumulation, fused (no K axis).
    y_bf16 = jax.block_until_ready(readout_forward(x, weight, bias))
    assert y_bf16.shape == (batch, num_targets)
    assert y_bf16.dtype == x.dtype
    assert jnp.allclose(y_bf16, y_ref, atol=8e-2, rtol=5e-2), \
        "bf16 path mismatch vs reference"

    # Full-f32 streams for closer parity with torch F.linear numerics.
    y_f32 = jax.block_until_ready(
        readout_forward(x, weight, bias, compute_dtype=None))
    assert jnp.allclose(y_f32, y_ref, atol=2e-2, rtol=2e-2), \
        "f32 path mismatch vs reference"

    # Force the K-tiled fallback (tiny VMEM budget) and check it too.
    y_ktiled = jax.block_until_ready(
        readout_forward(x, weight, bias, compute_dtype=None,
                        vmem_budget_bytes=1 << 20,
                        tile_features_fallback=512))
    assert jnp.allclose(y_ktiled, y_ref, atol=2e-2, rtol=2e-2), \
        "K-tiled path mismatch vs reference"

    print("KERNEL_OK")
</pallas_src>

<mosaic_0001>
module attributes {stable_mosaic.version = 11 : i64} {
  func.func @_readout_kernel_fused(%arg0: i32, %arg1: i32, %arg2: memref<144x1024xbf16, #tpu.memory_space<vmem>>, %arg3: memref<1024x128xbf16, #tpu.memory_space<vmem>>, %arg4: memref<1x128xf32, #tpu.memory_space<vmem>>, %arg5: memref<144x128xf32, #tpu.memory_space<vmem>>) attributes {dimension_semantics = [#tpu.dimension_semantics<parallel>, #tpu.dimension_semantics<parallel>], iteration_bounds = array<i64: 2, 1>, scalar_prefetch = 0 : i64, scratch_operands = 0 : i64, tpu.core_type = #tpu.core_type<tc>, window_params = [{transform_indices = @transform_0, window_bounds = array<i64: 144, 1024>}, {transform_indices = @transform_1, window_bounds = array<i64: 1024, 128>}, {transform_indices = @transform_2, window_bounds = array<i64: 1, 128>}, {transform_indices = @transform_3, window_bounds = array<i64: 144, 128>}]} {
    %c0 = arith.constant 0 : index
    %c0_0 = arith.constant 0 : index
    %0 = vector.load %arg2[%c0, %c0_0] : memref<144x1024xbf16, #tpu.memory_space<vmem>>, vector<144x1024xbf16>
    %c0_1 = arith.constant 0 : index
    %c0_2 = arith.constant 0 : index
    %1 = vector.load %arg3[%c0_1, %c0_2] : memref<1024x128xbf16, #tpu.memory_space<vmem>>, vector<1024x128xbf16>
    %cst = arith.constant dense<0.000000e+00> : vector<144x128xf32>
    %2 = tpu.matmul %0, %1, %cst {dimension_numbers = #tpu.dot_dimension_numbers<[1], [0], [0], [1], [0, 0, 1, 1], [], []>} : vector<144x1024xbf16>, vector<1024x128xbf16>, vector<144x128xf32> -> vector<144x128xf32>
    %c0_3 = arith.constant 0 : index
    %c0_4 = arith.constant 0 : index
    %3 = vector.load %arg4[%c0_3, %c0_4] : memref<1x128xf32, #tpu.memory_space<vmem>>, vector<1x128xf32>
    %4 = vector.broadcast %3 : vector<1x128xf32> to vector<144x128xf32>
    %5 = arith.addf %2, %4 : vector<144x128xf32>
    %c0_5 = arith.constant 0 : index
    %c0_6 = arith.constant 0 : index
    %6 = vector.load %arg5[%c0_5, %c0_6] : memref<144x128xf32, #tpu.memory_space<vmem>>, vector<144x128xf32>
    tpu.vector_store %arg5[%c0_5, %c0_6], %5 {strides = array<i32>} : memref<144x128xf32, #tpu.memory_space<vmem>>, vector<144x128xf32>,
    return
  }
  func.func @transform_0(%arg0: i32, %arg1: i32) -> (i32, i32) {
    %c0_i32 = arith.constant 0 : i32
    %c0_i32_0 = arith.constant 0 : i32
    return %arg0, %c0_i32 : i32, i32
  }
  func.func @transform_1(%arg0: i32, %arg1: i32) -> (i32, i32) {
    %c0_i32 = arith.constant 0 : i32
    %c0_i32_0 = arith.constant 0 : i32
    return %c0_i32, %arg1 : i32, i32
  }
  func.func @transform_2(%arg0: i32, %arg1: i32) -> (i32, i32) {
    %c0_i32 = arith.constant 0 : i32
    %c0_i32_0 = arith.constant 0 : i32
    return %c0_i32, %arg1 : i32, i32
  }
  func.func @transform_3(%arg0: i32, %arg1: i32) -> (i32, i32) {
    %c0_i32 = arith.constant 0 : i32
    return %arg0, %arg1 : i32, i32
  }
}

</mosaic_0001>

<bundles_post_ra>
// kernel: tpu_custom_call.1
= control target key start
LH: loop header
LB: loop body
LE: loop exit
PB: predicated region body
PF: predicated region fallthrough
CT: control target
= control target key end

     0   :  { %8 = vsyncpa [#allocation3], 0  ;;  %s2895_s0 = inlined_call_operand.hbm [shape: bf16[288,1024], index: 0, kind: input, shape index: {}]   ;;  %s2896_s1 = inlined_call_operand.hbm [shape: bf16[1024,128], index: 1, kind: input, shape index: {}]   ;;  %s2897_s2 = inlined_call_operand.vmem [shape: f32[1,128], index: 2, kind: input, shape index: {}]   ;;  %s2898_s3 = inlined_call_operand.hbm [shape: f32[288,128], index: 3, kind: output, shape index: {}]  }
   0x1   :  { %10 = vsyncpa [#allocation3 + $0x1], 0 }
   0x2   :  { %11 = vsyncpa [#allocation6], 0 }
   0x3   :  { %12 = vsyncpa [#allocation4], 0 }
   0x4   :  { %14 = vsyncpa [#allocation4 + $0x1], 0  ;;  %s2509_s12 = smov 0   ;;  %s2511_s13 = smov 0  }
   0x5   :  { %s2513_s14 = smov 0   ;;  %s2515_s15 = smov 0  }
   0x6   :  { %s2517_s16 = smov 0   ;;  %s2519_s17 = smov 0  }
   0x7 LB: > { %s1754_s18 = sadd.s32 4294967295, %s2478_s17   ;;  %s1755_s19 = sadd.s32 4294967294, %s2478_s17   ;;  %s2478_s17 = sphi %s2519_s17, %s20_s17   ;;  %s2474_s16 = sphi %s2517_s16, %s2921_s16   ;;  %s2470_s15 = sphi %s2515_s15, %s2920_s15   ;;  %s2466_s14 = sphi %s2513_s14, %s2919_s14   ;;  %s2462_s13 = sphi %s2511_s13, %s2918_s13   ;;  %s2458_s12 = sphi %s2509_s12, %s2917_s12  }
   0x8   : > { %p52_p0 = scmp.ne.s32.totalorder %s2462_s13, %s2458_s12  ;;  %p2543_p1 = scmp.eq.s32.totalorder %s1754_s18, 0 }
   0x9   : > { %p2547_p2 = scmp.eq.s32.totalorder %s1754_s18, 1  ;;  %p136_p3 = scmp.eq.s32.totalorder %s1755_s19, 1 }
   0xa   : > { %s2903_s20 = scalar_select %p2543_p1, 1, 0 }
   0xb   : > { %s2904_s21 = scalar_select %p2547_p2, 1, 0 }
   0xc   : > { %p2553_p4 = por %p2543_p1, %p52_p0  ;;  %p1756_p5 = scmp.ge.s32.totalorder %s2478_s17, 1 }
   0xd   : > { %p2558_p6 = por %p136_p3, %p52_p0  ;;  %p143_p7 = scmp.lt.s32.totalorder %s2478_s17, 3 }
   0xe   : > { %s2905_s22 = scalar_select %p2553_p4, 1, 0 }
   0xf   : > { %s2906_s23 = scalar_select %p2558_p6, 1, 0 }
  0x10   : > { %p2563_p8 = pnand %p1756_p5, %p143_p7  ;;  %s2480_s25 = smov [#allocation5]  }
  0x11   : > { %s157_s26 = sshll.u32 %s2480_s25, 4  ;;  %s32_s28 = sadd.s32 1, %s2474_s16  ;;  %s158_s26 = int_to_ptr.vmem [resolvable:$true] %s157_s26 }
  0x12   : > { %s2907_s24 = scalar_select %p2563_p8, 1, 0 }
  0x13   : > { %p2199_p9 = pneg %p2563_p8  ;;  %s2334_s4 = scalar_lea.hbm %s2896_s1, 8192 }
  0x14   : > { %p2335_p12 = scmp.ne.s32.totalorder %s2896_s1, %s2334_s4  ;;  %p2341_p5 = scmp.lt.u32.totalorder %s2334_s4, %s2896_s1 }
  0x15   : > { %p2572_p11 = pnand %p2199_p9, %p2543_p1 }
  0x17   : > { %p2336_p13 = pneg %p2572_p11 }
  0x19   : > { %p2337_p0 = pnand %p2336_p13, %p2335_p12 }
  0x1b   : > { %p2338_p3 = pneg %p2337_p0 }
  0x1d   : > { %p2343_p7 = pnand %p2341_p5, %p2338_p3 }
  0x1f   : > { %2346 = shalt.err (!%p2343_p7)
}
  0x20   : > { %s2347_s9 = scalar_lea.vmem %s158_s26, 8192  ;;  %p2355_p1 = scmp.lt.s32.totalorder %s158_s26, %s158_s26 }
  0x21   : > { %p2348_p9 = scmp.ne.s32.totalorder %s158_s26, %s2347_s9  ;;  %p2356_p4 = scmp.lt.s32.totalorder %s2347_s9, %s2347_s9 }
  0x23   : > { %p2350_p10 = pnand %p2348_p9, %p2336_p13  ;;  %p2357_p8 = por %p2356_p4, %p2355_p1 }
  0x25   : > { %p2351_p6 = pneg %p2350_p10 }
  0x27   : > { %p2358_p2 = pnand %p2357_p8, %p2351_p6 }
  0x29   : > { %2361 = shalt.err (!%p2358_p2)
}
  0x2a   : > { %s2481_s10 = smov 64   ;;  %s2482_s11 = smov 4  }
  0x2b   : > { %2202 = dma.hbm_to_vmem [thread:$0]  (!%p2572_p11), %s2896_s1, 8192, %s158_s26, [#allocation6], %s2481_s10, %s2481_s10, %s2482_s11  }
  0x2c   : > { %p34_p1 = scmp.ge.s32.totalorder %s32_s28, 2  ;;  %s39_s25 = sadd.s32 1, %s2466_s14 }
  0x2d   : > { %p46_p2 = scmp.ne.s32.totalorder %s2466_s14, %s2462_s13  ;;  %p47_p4 = scmp.eq.s32.totalorder %s2478_s17, 0 }
  0x2e   : > { %s2923_s28 = smov (%p34_p1, %s32_s28), 0  ;;  %p2909_p8 = scmp.ne.s32.totalorder %s2904_s21, 0 }
  0x2f   : > { %p48_p6 = por %p47_p4, %p46_p2  ;;  %s36_s30 = ssub.s32 %s2474_s16, %s2923_s28 }
  0x30   : > { %p2601_p10 = por %p2909_p8, %p46_p2  ;;  %p2212_p12 = scmp.lt.s32.totalorder %s2478_s17, 2 }
  0x31   : > { %p37_p13 = scmp.eq.s32.totalorder %s36_s30, 0  ;;  %s177_s27 = sand.u32 1, %s2466_s14  }
  0x32   : > { %s2188_s4 = smul.u32 576, %s177_s27  ;;  %p2613_p11 = pnand %p2212_p12, %p48_p6 }
  0x33   : > { %s2610_s5 = scalar_select %p37_p13, %s2466_s14, %s39_s25  }
  0x34   : > { %s1907_s26 = smul.u32 9216, %s2474_s16  ;;  %s181_s6 = scalar_lea.vmem [#allocation2], %s2188_s4 }
  0x35   : > { %s189_s7 = sshll.u32 %s181_s6, 4  ;;  %s2624_s11 = scalar_lea.sflag [#allocation3], %s177_s27  ;;  %s2622_s7 = int_to_ptr.vmem [resolvable:$true] %s189_s7 }
  0x36   : > { %s2620_s10 = scalar_lea.hbm %s2895_s0, %s1907_s26  ;;  %p2364_p3 = pneg %p2613_p11 }
  0x37   : > { %s2362_s18 = scalar_lea.hbm %s2620_s10, 9216  ;;  %s2367_s30 = scalar_lea.hbm %s2895_s0, 18432 }
  0x38   : > { %p2363_p0 = scmp.ne.s32.totalorder %s2620_s10, %s2362_s18  ;;  %p2368_p9 = scmp.lt.u32.totalorder %s2620_s10, %s2895_s0 }
  0x39   : > { %p2369_p1 = scmp.lt.u32.totalorder %s2367_s30, %s2362_s18  ;;  %p2371_p4 = scmp.lt.u32.totalorder %s2362_s18, %s2620_s10 }
  0x3a   : > { %p2365_p5 = pnand %p2364_p3, %p2363_p0 }
  0x3b   : > { %p2370_p2 = por %p2369_p1, %p2368_p9 }
  0x3c   : > { %p2366_p7 = pneg %p2365_p5 }
  0x3d   : > { %p2372_p6 = por %p2371_p4, %p2370_p2 }
  0x3f   : > { %p2373_p8 = pnand %p2372_p6, %p2366_p7 }
  0x41   : > { %2376 = shalt.err (!%p2373_p8)
}
  0x42   : > { %s2377_s27 = scalar_lea.vmem %s2622_s7, 9216  ;;  %s2483_s6 = smov [#allocation2]  }
  0x43   : > { %p2378_p12 = scmp.ne.s32.totalorder %s2622_s7, %s2377_s27  ;;  %s2382_s9 = sshll.u32 %s2483_s6, 4  ;;  %s2383_s9 = int_to_ptr.vmem [resolvable:$false] %s2382_s9 }
  0x44   : > { %s2384_s21 = scalar_lea.vmem %s2383_s9, 18432  ;;  %p2385_p5 = scmp.lt.s32.totalorder %s2622_s7, %s2383_s9 }
  0x45   : > { %p2380_p13 = pnand %p2378_p12, %p2364_p3  ;;  %p2386_p9 = scmp.lt.s32.totalorder %s2384_s21, %s2377_s27 }
  0x47   : > { %p2381_p0 = pneg %p2380_p13  ;;  %p2387_p1 = por %p2386_p9, %p2385_p5 }
  0x49   : > { %p2388_p2 = pnand %p2387_p1, %p2381_p0 }
  0x4b   : > { %2391 = shalt.err (!%p2388_p2)
}
  0x4c   : > { %s2484_s18 = smov 512   ;;  %s2485_s19 = smov 32  }
  0x4d   : > { %2206 = dma.hbm_to_vmem [thread:$0]  (!%p2613_p11), %s2620_s10, 9216, %s2622_s7, %s2624_s11, %s2484_s18, %s2484_s18, %s2485_s19  }
  0x4e   : > { %p2912_p3 = scmp.ne.s32.totalorder %s2907_s24, 0 }
  0x4f   : > { %s2655_s25 = sand.u32 (!%p2912_p3), 1, %s2462_s13   ;;  %p2913_p7 = scmp.ne.s32.totalorder (!%p2912_p3), %s2905_s22, 0 }
  0x50   : > { %201 = sbr.rel (%p2912_p3) target bundleno = 497 (0x1f1), region = 32  ;;  %s204_s4 = scalar_lea.sflag (!%p2912_p3), [#allocation3], %s2655_s25 }
  0x51   : > { %s2189_s30 = smul.u32 (!%p2912_p3), 576, %s2655_s25 }
  0x53   : > { %s2659_s26 = scalar_lea.vmem (!%p2912_p3), [#allocation2], %s2189_s30 }
  0x57   : > { %2445 = dma.done.wait (%p2913_p7), %s204_s4, 9216  }
  0x58   : > { %2447 = vsyncadd (%p2913_p7), %s204_s4, 4294958080  ;;  %p2914_p11 = scmp.ne.s32.totalorder %s2903_s20, 0 }
  0x5a   : > { %2449 = dma.done.wait (%p2914_p11), [#allocation6], 8192  }
  0x5b   : > { %2451 = vsyncadd (%p2914_p11), [#allocation6], 4294959104  ;;  %v2270_v0 = vld [vmem:[#allocation5 + $0x40] sm:$0xff]   ;;  %v2274_v4 = vld [vmem:[#allocation5 + $0x48] sm:$0xff]   ;;  %s2190_s24 = smul.u32 144, %s2655_s25  ;;  %s2486_s21 = smov [#allocation7]  }
  0x5c   : > { %v2271_v1 = vld [vmem:[#allocation5 + $0xc0] sm:$0xff]   ;;  %1908 = vmatprep.subr.bf16.mxu0 %v2270_v0  ;;  %v2275_v5 = vld [vmem:[#allocation5 + $0xc8] sm:$0xff]   ;;  %v2278_v8 = vld [vmem:[#allocation5 + $0x50] sm:$0xff]   ;;  %s1906_s8 = smul.u32 2304, %s2470_s15  ;;  %s1633_s15 = scalar_lea.sflag [#allocation4], %s2655_s25 }
  0x5d   : > { %v2272_v2 = vld [vmem:[#allocation5] sm:$0xff]   ;;  %1978 = vmatprep.subr.bf16.mxu1 %v2271_v1  ;;  %v2276_v6 = vld [vmem:[#allocation5 + $0x8] sm:$0xff]   ;;  %v2279_v9 = vld [vmem:[#allocation5 + $0xd0] sm:$0xff]   ;;  %s2803_s7 = scalar_lea.vmem [#allocation7], %s2190_s24  ;;  %s2396_s18 = sshll.u32 %s2486_s21, 4  ;;  %s2397_s18 = int_to_ptr.vmem [resolvable:$false] %s2396_s18 }
  0x5e   : > { %v2273_v3 = vld [vmem:[#allocation5 + $0x80] sm:$0xff]   ;;  %1909 = vmatpush3.bf16.msra.mxu0 %v2272_v2  ;;  %v2277_v7 = vld [vmem:[#allocation5 + $0x88] sm:$0xff]   ;;  %v2280_v10 = vld [vmem:[#allocation5 + $0x10] sm:$0xff]   ;;  %s1647_s10 = sshll.u32 %s2803_s7, 4  ;;  %s2842_s6 = scalar_lea.hbm %s2898_s3, %s1906_s8  ;;  %s2844_s10 = int_to_ptr.vmem [resolvable:$true] %s1647_s10 }
  0x5f   : > { %1979 = vmatpush3.bf16.msra.mxu1 %v2273_v3  ;;  %1910 = vmatprep.subr.bf16.mxu0 %v2274_v4  ;;  %v2281_v11 = vld [vmem:[#allocation5 + $0x90] sm:$0xff]   ;;  %v2282_v12 = vld [vmem:[#allocation5 + $0x58] sm:$0xff]   ;;  %v2286_v16 = vld [vmem:[#allocation5 + $0x60] sm:$0xff]   ;;  %s2392_s9 = scalar_lea.vmem %s2844_s10, 2304  ;;  %s2398_s19 = scalar_lea.vmem %s2397_s18, 4608 }
  0x60   : > { %1980 = vmatprep.subr.bf16.mxu1 %v2275_v5  ;;  %v2283_v13 = vld [vmem:[#allocation5 + $0xd8] sm:$0xff]   ;;  %v2287_v17 = vld [vmem:[#allocation5 + $0xe0] sm:$0xff]   ;;  %v2290_v20 = vld [vmem:[#allocation5 + $0x68] sm:$0xff]   ;;  %p2393_p4 = scmp.ne.s32.totalorder %s2844_s10, %s2392_s9  ;;  %p2399_p12 = scmp.lt.s32.totalorder %s2844_s10, %s2397_s18 }
  0x61   : > { %v2284_v14 = vld [vmem:[#allocation5 + $0x18] sm:$0xff]   ;;  %v2288_v18 = vld [vmem:[#allocation5 + $0x20] sm:$0xff]   ;;  %v2291_v21 = vld [vmem:[#allocation5 + $0xe8] sm:$0xff]   ;;  %p2400_p13 = scmp.lt.s32.totalorder %s2398_s19, %s2392_s9 }
  0x62   : > { %1911 = vmatpush3.bf16.msra.mxu0 %v2276_v6  ;;  %v2285_v15 = vld [vmem:[#allocation5 + $0x98] sm:$0xff]   ;;  %v2289_v19 = vld [vmem:[#allocation5 + $0xa0] sm:$0xff]   ;;  %v2292_v22 = vld [vmem:[#allocation5 + $0x28] sm:$0xff]   ;;  %p2394_p6 = pnand %p2393_p4, %p2601_p10 }
  0x63   : > { %1981 = vmatpush3.bf16.msra.mxu1 %v2277_v7  ;;  %1912 = vmatprep.subr.bf16.mxu0 %v2278_v8  ;;  %v2293_v23 = vld [vmem:[#allocation5 + $0xa8] sm:$0xff]   ;;  %v2294_v24 = vld [vmem:[#allocation5 + $0x70] sm:$0xff]   ;;  %v2298_v28 = vld [vmem:[#allocation5 + $0x78] sm:$0xff]   ;;  %p2401_p0 = por %p2400_p13, %p2399_p12 }
  0x64   : > { %1982 = vmatprep.subr.bf16.mxu1 %v2279_v9  ;;  %v2295_v25 = vld [vmem:[#allocation5 + $0xf0] sm:$0xff]   ;;  %v2299_v29 = vld [vmem:[#allocation5 + $0xf8] sm:$0xff]   ;;  %v243_v32 = vld [vmem:[%s2659_s26] sm:$0xff]  ;;  %p2395_p8 = pneg %p2394_p6 }
  0x65   : > { %v2296_v26 = vld [vmem:[#allocation5 + $0x30] sm:$0xff]   ;;  %v2300_v30 = vld [vmem:[#allocation5 + $0x38] sm:$0xff]   ;;  %v247_v33 = vld [vmem:[%s2659_s26 + $0x20] sm:$0xff] }
  0x66   : > { %1913 = vmatpush3.bf16.msra.mxu0 %v2280_v10  ;;  %v2297_v27 = vld [vmem:[#allocation5 + $0xb0] sm:$0xff]   ;;  %v2301_v31 = vld [vmem:[#allocation5 + $0xb8] sm:$0xff]   ;;  %v244_v34 = vld [vmem:[%s2659_s26 + $0x8] sm:$0xff]  ;;  %v1765_v35 = vcombine.low %v243_v32, %v247_v33  ;;  %v1766_v36 = vcombine.high %v243_v32, %v247_v33  ;;  %p2402_p5 = pnand %p2401_p0, %p2395_p8 }
  0x67   : > { %1983 = vmatpush3.bf16.msra.mxu1 %v2281_v11  ;;  %1914 = vmatprep.subr.bf16.mxu0 %v2282_v12  ;;  %v248_v37 = vld [vmem:[%s2659_s26 + $0x28] sm:$0xff]  ;;  %v2302_v40 = vld [vmem:[#allocation5 + $0x140] sm:$0xff]   ;;  %v2310_v62 = vld [vmem:[#allocation5 + $0x150] sm:$0xff]  }
  0x68   : > { %1984 = vmatprep.subr.bf16.mxu1 %v2283_v13  ;;  %v1767_v38 = vcombine.low %v244_v34, %v248_v37  ;;  %v1768_v39 = vcombine.high %v244_v34, %v248_v37  ;;  %1226 = vmatprep.mubr.bf16.mxu0 %v1766_v36  ;;  %v2303_v41 = vld [vmem:[#allocation5 + $0x100] sm:$0xff]   ;;  %v252_v47 = vld [vmem:[%s2659_s26 + $0x48] sm:$0xff]  ;;  %v2311_v63 = vld [vmem:[#allocation5 + $0x110] sm:$0xff]  }
  0x69   : > { %v2304_v42 = vld [vmem:[#allocation5 + $0x1c0] sm:$0xff]   ;;  %v256_v48 = vld [vmem:[%s2659_s26 + $0x68] sm:$0xff]  ;;  %v2312_v0 = vld [vmem:[#allocation5 + $0x1d0] sm:$0xff]  }
  0x6a   : > { %1915 = vmatpush3.bf16.msra.mxu0 %v2284_v14  ;;  %1331 = vmatprep.mubr.bf16.mxu1 %v1768_v39  ;;  %v2305_v43 = vld [vmem:[#allocation5 + $0x180] sm:$0xff]   ;;  %v1776_v49 = vcombine.high %v252_v47, %v256_v48  ;;  %v2306_v50 = vld [vmem:[#allocation5 + $0x148] sm:$0xff]   ;;  %v1775_v53 = vcombine.low %v252_v47, %v256_v48  ;;  %v2313_v1 = vld [vmem:[#allocation5 + $0x190] sm:$0xff]  }
  0x6b   : > { %1985 = vmatpush3.bf16.msra.mxu1 %v2285_v15  ;;  %1916 = vmatprep.subr.bf16.mxu0 %v2286_v16  ;;  %v251_v44 = vld [vmem:[%s2659_s26 + $0x40] sm:$0xff]  ;;  %v2307_v52 = vld [vmem:[#allocation5 + $0x108] sm:$0xff]   ;;  %v2314_v10 = vld [vmem:[#allocation5 + $0x158] sm:$0xff]  }
  0x6c   : > { %1986 = vmatprep.subr.bf16.mxu1 %v2287_v17  ;;  %v255_v45 = vld [vmem:[%s2659_s26 + $0x60] sm:$0xff]  ;;  %v2308_v54 = vld [vmem:[#allocation5 + $0x1c8] sm:$0xff]   ;;  %v2315_v11 = vld [vmem:[#allocation5 + $0x118] sm:$0xff]  }
  0x6d   : > { %v1774_v46 = vcombine.high %v251_v44, %v255_v45  ;;  %v1773_v51 = vcombine.low %v251_v44, %v255_v45  ;;  %v2309_v55 = vld [vmem:[#allocation5 + $0x188] sm:$0xff]   ;;  %v259_v56 = vld [vmem:[%s2659_s26 + $0x80] sm:$0xff]  ;;  %v2316_v12 = vld [vmem:[#allocation5 + $0x1d8] sm:$0xff]  }
  0x6e   : > { %1917 = vmatpush3.bf16.msra.mxu0 %v2288_v18  ;;  %v263_v57 = vld [vmem:[%s2659_s26 + $0xa0] sm:$0xff]  ;;  %v260_v58 = vld [vmem:[%s2659_s26 + $0x88] sm:$0xff]  ;;  %v2317_v13 = vld [vmem:[#allocation5 + $0x198] sm:$0xff]  }
  0x6f   : > { %1987 = vmatpush3.bf16.msra.mxu1 %v2289_v19  ;;  %1918 = vmatprep.subr.bf16.mxu0 %v2290_v20  ;;  %v264_v59 = vld [vmem:[%s2659_s26 + $0xa8] sm:$0xff]  ;;  %v1782_v60 = vcombine.high %v259_v56, %v263_v57  ;;  %v1781_v2 = vcombine.low %v259_v56, %v263_v57  ;;  %v267_v3 = vld [vmem:[%s2659_s26 + $0xc0] sm:$0xff]  ;;  %v2330_v47 = vld [vmem:[#allocation5 + $0x178] sm:$0xff]  }
  0x70   : > { %1988 = vmatprep.subr.bf16.mxu1 %v2291_v21  ;;  %v1784_v61 = vcombine.high %v260_v58, %v264_v59  ;;  %v271_v4 = vld [vmem:[%s2659_s26 + $0xe0] sm:$0xff]  ;;  %v268_v5 = vld [vmem:[%s2659_s26 + $0xc8] sm:$0xff]  ;;  %v1783_v6 = vcombine.low %v260_v58, %v264_v59 }
  0x71   : > { %v1790_v7 = vcombine.high %v267_v3, %v271_v4  ;;  %v272_v8 = vld [vmem:[%s2659_s26 + $0xe8] sm:$0xff]  ;;  %v275_v14 = vld [vmem:[%s2659_s26 + $0x100] sm:$0xff]  ;;  %v1789_v19 = vcombine.low %v267_v3, %v271_v4 }
  0x72   : > { %1919 = vmatpush3.bf16.msra.mxu0 %v2292_v22  ;;  %v1792_v9 = vcombine.high %v268_v5, %v272_v8  ;;  %v279_v15 = vld [vmem:[%s2659_s26 + $0x120] sm:$0xff]  ;;  %v276_v16 = vld [vmem:[%s2659_s26 + $0x108] sm:$0xff]  ;;  %v1791_v21 = vcombine.low %v268_v5, %v272_v8  ;;  %v246_v8 = vld [vmem:[%s2659_s26 + $0x18] sm:$0xff] }
  0x73   : > { %1989 = vmatpush3.bf16.msra.mxu1 %v2293_v23  ;;  %1920 = vmatprep.subr.bf16.mxu0 %v2294_v24  ;;  %v280_v17 = vld [vmem:[%s2659_s26 + $0x128] sm:$0xff]  ;;  %v2318_v18 = vld [vmem:[#allocation5 + $0x160] sm:$0xff]   ;;  %v1798_v22 = vcombine.high %v275_v14, %v279_v15  ;;  %v1797_v32 = vcombine.low %v275_v14, %v279_v15  ;;  %v253_v14 = vld [vmem:[%s2659_s26 + $0x50] sm:$0xff] }
  0x74   : > { %1990 = vmatprep.subr.bf16.mxu1 %v2295_v25  ;;  %v2319_v20 = vld [vmem:[#allocation5 + $0x120] sm:$0xff]   ;;  %v1800_v24 = vcombine.high %v276_v16, %v280_v17  ;;  %v2324_v33 = vld [vmem:[#allocation5 + $0x1e8] sm:$0xff]   ;;  %v1799_v34 = vcombine.low %v276_v16, %v280_v17  ;;  %v257_v15 = vld [vmem:[%s2659_s26 + $0x70] sm:$0xff] }
  0x75   : > { %v2320_v23 = vld [vmem:[#allocation5 + $0x1e0] sm:$0xff]   ;;  %v2325_v36 = vld [vmem:[#allocation5 + $0x1a8] sm:$0xff]   ;;  %v254_v16 = vld [vmem:[%s2659_s26 + $0x58] sm:$0xff] }
  0x76   : > { %1921 = vmatpush3.bf16.msra.mxu0 %v2296_v26  ;;  %v2321_v25 = vld [vmem:[#allocation5 + $0x1a0] sm:$0xff]   ;;  %v2322_v26 = vld [vmem:[#allocation5 + $0x168] sm:$0xff]   ;;  %v258_v17 = vld [vmem:[%s2659_s26 + $0x78] sm:$0xff] }
  0x77   : > { %1991 = vmatpush3.bf16.msra.mxu1 %v2297_v27  ;;  %1922 = vmatprep.subr.bf16.mxu0 %v2298_v28  ;;  %v2323_v27 = vld [vmem:[#allocation5 + $0x128] sm:$0xff]   ;;  %v283_v28 = vld [vmem:[%s2659_s26 + $0x140] sm:$0xff] }
  0x78   : > { %1992 = vmatprep.subr.bf16.mxu1 %v2299_v29  ;;  %v287_v29 = vld [vmem:[%s2659_s26 + $0x160] sm:$0xff]  ;;  %v292_v44 = vld [vmem:[%s2659_s26 + $0x188] sm:$0xff] }
  0x79   : > { %v291_v39 = vld [vmem:[%s2659_s26 + $0x180] sm:$0xff]  ;;  %v296_v45 = vld [vmem:[%s2659_s26 + $0x1a8] sm:$0xff] }
  0x7a   : > { %1923 = vmatpush3.bf16.msra.mxu0 %v2300_v30  ;;  %v284_v30 = vld [vmem:[%s2659_s26 + $0x148] sm:$0xff]  ;;  %v1815_v59 = vcombine.low %v292_v44, %v296_v45 }
  0x7b   : > { %1993 = vmatpush3.bf16.msra.mxu1 %v2301_v31  ;;  %2048 = vmatprep.subr.bf16.mxu0 %v2302_v40  ;;  %v288_v31 = vld [vmem:[%s2659_s26 + $0x168] sm:$0xff]  ;;  %v2327_v40 = vld [vmem:[#allocation5 + $0x130] sm:$0xff]  }
  0x7c   : > { %2118 = vmatprep.subr.bf16.mxu1 %v2304_v42  ;;  %v1808_v37 = vcombine.high %v284_v30, %v288_v31  ;;  %v295_v42 = vld [vmem:[%s2659_s26 + $0x1a0] sm:$0xff]  ;;  %v1807_v48 = vcombine.low %v284_v30, %v288_v31  ;;  %v300_v56 = vld [vmem:[%s2659_s26 + $0x1c8] sm:$0xff]  ;;  %v269_v30 = vld [vmem:[%s2659_s26 + $0xd0] sm:$0xff] }
  0x7d   : > { %1227 = vmatmul.mubr.bf16.vlgmr.msra.gmra.mrb[0].mxu0 %v1765_v35  ;;  %v1806_v35 = vcombine.high %v283_v28, %v287_v29  ;;  %v304_v57 = vld [vmem:[%s2659_s26 + $0x1e8] sm:$0xff]  ;;  %v1813_v58 = vcombine.low %v291_v39, %v295_v42  ;;  %v273_v31 = vld [vmem:[%s2659_s26 + $0xf0] sm:$0xff] }
  0x7e   : > { %1332 = vmatmul.mubr.bf16.vlgmr.msra.gmra.mrb[0].mxu1 %v1767_v38  ;;  %2049 = vmatpush3.bf16.msra.mxu0 %v2303_v41  ;;  %v2326_v38 = vld [vmem:[#allocation5 + $0x170] sm:$0xff]   ;;  %v1823_v3 = vcombine.low %v300_v56, %v304_v57 }
  0x7f   : > { %2119 = vmatpush3.bf16.msra.mxu1 %v2305_v43  ;;  %1234 = vmatprep.mubr.bf16.mxu0 %v1774_v46  ;;  %v2328_v41 = vld [vmem:[#allocation5 + $0x1f0] sm:$0xff]   ;;  %v1805_v46 = vcombine.low %v283_v28, %v287_v29 }
  0x80   : > { %1339 = vmatprep.mubr.bf16.mxu1 %v1776_v49  ;;  %2050 = vmatprep.subr.bf16.mxu0 %v2306_v50  ;;  %v2329_v43 = vld [vmem:[#allocation5 + $0x1b0] sm:$0xff]   ;;  %v1814_v49 = vcombine.high %v291_v39, %v295_v42  ;;  %v2331_v50 = vld [vmem:[#allocation5 + $0x138] sm:$0xff]   ;;  %v1793_v42 = vcombine.low %v269_v30, %v273_v31 }
  0x81   : > { %2120 = vmatprep.subr.bf16.mxu1 %v2308_v54  ;;  %v299_v54 = vld [vmem:[%s2659_s26 + $0x1c0] sm:$0xff]  ;;  %v281_v39 = vld [vmem:[%s2659_s26 + $0x130] sm:$0xff] }
  0x82   : > { %2051 = vmatpush3.bf16.msra.mxu0 %v2307_v52  ;;  %v2332_v52 = vld [vmem:[#allocation5 + $0x1f8] sm:$0xff]  }
  0x83   : > { %2121 = vmatpush3.bf16.msra.mxu1 %v2309_v55  ;;  %2052 = vmatprep.subr.bf16.mxu0 %v2310_v62  ;;  %v303_v55 = vld [vmem:[%s2659_s26 + $0x1e0] sm:$0xff] }
  0x84   : > { %2122 = vmatprep.subr.bf16.mxu1 %v2312_v0  ;;  %v307_v62 = vld [vmem:[%s2659_s26 + $0x200] sm:$0xff]  ;;  %v308_v0 = vld [vmem:[%s2659_s26 + $0x208] sm:$0xff] }
  0x85   : > { %1235 = vmatmul.mubr.bf16.gmra.mrb[4].mxu0 %v1773_v51  ;;  %v1816_v51 = vcombine.high %v292_v44, %v296_v45 }
  0x86   : > { %1340 = vmatmul.mubr.bf16.gmra.mrb[4].mxu1 %v1775_v53  ;;  %1242 = vmatprep.mubr.bf16.mxu0 %v1782_v60  ;;  %v2333_v53 = vld [vmem:[#allocation5 + $0x1b8] sm:$0xff]   ;;  %v1822_v60 = vcombine.high %v299_v54, %v303_v55 }
  0x87   : > { %1347 = vmatprep.mubr.bf16.mxu1 %v1784_v61  ;;  %2053 = vmatpush3.bf16.msra.mxu0 %v2311_v63  ;;  %v1824_v61 = vcombine.high %v300_v56, %v304_v57  ;;  %v311_v63 = vld [vmem:[%s2659_s26 + $0x220] sm:$0xff]  ;;  %v294_v56 = vld [vmem:[%s2659_s26 + $0x198] sm:$0xff] }
  0x88   : > { %2123 = vmatpush3.bf16.msra.mxu1 %v2313_v1  ;;  %2054 = vmatprep.subr.bf16.mxu0 %v2314_v10  ;;  %v312_v1 = vld [vmem:[%s2659_s26 + $0x228] sm:$0xff]  ;;  %v1830_v4 = vcombine.high %v307_v62, %v311_v63  ;;  %v1829_v10 = vcombine.low %v307_v62, %v311_v63  ;;  %v298_v57 = vld [vmem:[%s2659_s26 + $0x1b8] sm:$0xff]  ;;  %v301_v62 = vld [vmem:[%s2659_s26 + $0x1d0] sm:$0xff] }
  0x89   : > { %2124 = vmatprep.subr.bf16.mxu1 %v2316_v12  ;;  %v1832_v5 = vcombine.high %v308_v0, %v312_v1  ;;  %v305_v63 = vld [vmem:[%s2659_s26 + $0x1f0] sm:$0xff] }
  0x8b   : > { %2055 = vmatpush3.bf16.msra.mxu0 %v2315_v11  ;;  %v1831_v11 = vcombine.low %v308_v0, %v312_v1  ;;  %v302_v0 = vld [vmem:[%s2659_s26 + $0x1d8] sm:$0xff] }
  0x8c   : > { %2125 = vmatpush3.bf16.msra.mxu1 %v2317_v13  ;;  %2056 = vmatprep.subr.bf16.mxu0 %v2318_v18  ;;  %v306_v1 = vld [vmem:[%s2659_s26 + $0x1f8] sm:$0xff] }
  0x8d   : > { %1243 = vmatmul.mubr.bf16.gmra.mrb[8].mxu0 %v1781_v2  ;;  %2126 = vmatprep.subr.bf16.mxu1 %v2320_v23  ;;  %v1821_v2 = vcombine.low %v299_v54, %v303_v55  ;;  %v265_v23 = vld [vmem:[%s2659_s26 + $0xb0] sm:$0xff] }
  0x8e   : > { %1348 = vmatmul.mubr.bf16.gmra.mrb[8].mxu1 %v1783_v6  ;;  %1250 = vmatprep.mubr.bf16.mxu0 %v1790_v7  ;;  %v245_v6 = vld [vmem:[%s2659_s26 + $0x10] sm:$0xff] }
  0x8f   : > { %1355 = vmatprep.mubr.bf16.mxu1 %v1792_v9  ;;  %2057 = vmatpush3.bf16.msra.mxu0 %v2319_v20  ;;  %v249_v7 = vld [vmem:[%s2659_s26 + $0x30] sm:$0xff]  ;;  %v250_v9 = vld [vmem:[%s2659_s26 + $0x38] sm:$0xff]  ;;  %v1778_v20 = vcombine.high %v253_v14, %v257_v15 }
  0x90   : > { %2127 = vmatpush3.bf16.msra.mxu1 %v2321_v25  ;;  %2058 = vmatprep.subr.bf16.mxu0 %v2322_v26  ;;  %v1770_v12 = vcombine.high %v245_v6, %v249_v7  ;;  %v1772_v13 = vcombine.high %v246_v8, %v250_v9  ;;  %v1769_v18 = vcombine.low %v245_v6, %v249_v7  ;;  %v266_v25 = vld [vmem:[%s2659_s26 + $0xb8] sm:$0xff]  ;;  %v293_v54 = vld [vmem:[%s2659_s26 + $0x190] sm:$0xff] }
  0x91   : > { %2128 = vmatprep.subr.bf16.mxu1 %v2324_v33  ;;  %v1777_v26 = vcombine.low %v253_v14, %v257_v15  ;;  %v274_v33 = vld [vmem:[%s2659_s26 + $0xf8] sm:$0xff]  ;;  %v297_v55 = vld [vmem:[%s2659_s26 + $0x1b0] sm:$0xff] }
  0x92   : > { %v309_v6 = vld [vmem:[%s2659_s26 + $0x210] sm:$0xff] }
  0x93   : > { %2059 = vmatpush3.bf16.msra.mxu0 %v2323_v27  ;;  %v1779_v27 = vcombine.low %v254_v16, %v258_v17  ;;  %v313_v7 = vld [vmem:[%s2659_s26 + $0x230] sm:$0xff] }
  0x94   : > { %2129 = vmatpush3.bf16.msra.mxu1 %v2325_v36  ;;  %2060 = vmatprep.subr.bf16.mxu0 %v2326_v38  ;;  %v1794_v36 = vcombine.high %v269_v30, %v273_v31  ;;  %v277_v38 = vld [vmem:[%s2659_s26 + $0x110] sm:$0xff]  ;;  %v1833_v14 = vcombine.low %v309_v6, %v313_v7 }
  0x95   : > { %1251 = vmatmul.mubr.bf16.gmra.mrb[12].mxu0 %v1789_v19  ;;  %2130 = vmatprep.subr.bf16.mxu1 %v2328_v41  ;;  %v1771_v19 = vcombine.low %v246_v8, %v250_v9  ;;  %v282_v41 = vld [vmem:[%s2659_s26 + $0x138] sm:$0xff]  ;;  %v1802_v44 = vcombine.high %v277_v38, %v281_v39 }
  0x96   : > { %1356 = vmatmul.mubr.bf16.gmra.mrb[12].mxu1 %v1791_v21  ;;  %1258 = vmatprep.mubr.bf16.mxu0 %v1798_v22  ;;  %v1780_v21 = vcombine.high %v254_v16, %v258_v17  ;;  %v261_v22 = vld [vmem:[%s2659_s26 + $0x90] sm:$0xff]  ;;  %v310_v8 = vld [vmem:[%s2659_s26 + $0x218] sm:$0xff] }
  0x97   : > { %1363 = vmatprep.mubr.bf16.mxu1 %v1800_v24  ;;  %2061 = vmatpush3.bf16.msra.mxu0 %v2327_v40  ;;  %v262_v24 = vld [vmem:[%s2659_s26 + $0x98] sm:$0xff]  ;;  %v1786_v28 = vcombine.high %v261_v22, %v265_v23 }
  0x98   : > { %2131 = vmatpush3.bf16.msra.mxu1 %v2329_v43  ;;  %2062 = vmatprep.subr.bf16.mxu0 %v2330_v47  ;;  %v1788_v29 = vcombine.high %v262_v24, %v266_v25  ;;  %v278_v40 = vld [vmem:[%s2659_s26 + $0x118] sm:$0xff]  ;;  %v289_v47 = vld [vmem:[%s2659_s26 + $0x170] sm:$0xff] }
  0x99   : > { %2132 = vmatprep.subr.bf16.mxu1 %v2332_v52  ;;  %v1804_v45 = vcombine.high %v278_v40, %v282_v41  ;;  %v314_v9 = vld [vmem:[%s2659_s26 + $0x238] sm:$0xff] }
  0x9a   : > { %v1835_v15 = vcombine.low %v310_v8, %v314_v9 }
  0x9b   : > { %2063 = vmatpush3.bf16.msra.mxu0 %v2331_v50  ;;  %v1801_v50 = vcombine.low %v277_v38, %v281_v39 }
  0x9c   : > { %2133 = vmatpush3.bf16.msra.mxu1 %v2333_v53 }
  0x9d   : > { %1259 = vmatmul.mubr.bf16.gmra.mrb[16].mxu0 %v1797_v32  ;;  %v270_v32 = vld [vmem:[%s2659_s26 + $0xd8] sm:$0xff] }
  0x9e   : > { %1364 = vmatmul.mubr.bf16.gmra.mrb[16].mxu1 %v1799_v34  ;;  %1266 = vmatprep.mubr.bf16.mxu0 %v1806_v35  ;;  %v1785_v34 = vcombine.low %v261_v22, %v265_v23  ;;  %v1787_v35 = vcombine.low %v262_v24, %v266_v25  ;;  %v1795_v43 = vcombine.low %v270_v32, %v274_v33 }
  0x9f   : > { %1371 = vmatprep.mubr.bf16.mxu1 %v1808_v37  ;;  %v1796_v37 = vcombine.high %v270_v32, %v274_v33 }
  0xa5   : > { %1267 = vmatmul.mubr.bf16.gmra.mrb[20].mxu0 %v1805_v46  ;;  %v285_v46 = vld [vmem:[%s2659_s26 + $0x150] sm:$0xff] }
  0xa6   : > { %1372 = vmatmul.mubr.bf16.gmra.mrb[20].mxu1 %v1807_v48  ;;  %1274 = vmatprep.mubr.bf16.mxu0 %v1814_v49  ;;  %v286_v48 = vld [vmem:[%s2659_s26 + $0x158] sm:$0xff]  ;;  %v1810_v52 = vcombine.high %v285_v46, %v289_v47 }
  0xa7   : > { %1379 = vmatprep.mubr.bf16.mxu1 %v1816_v51  ;;  %v290_v49 = vld [vmem:[%s2659_s26 + $0x178] sm:$0xff]  ;;  %v1803_v51 = vcombine.low %v278_v40, %v282_v41 }
  0xa8   : > { %v1812_v53 = vcombine.high %v286_v48, %v290_v49 }
  0xad   : > { %1275 = vmatmul.mubr.bf16.gmra.mrb[24].mxu0 %v1813_v58  ;;  %v1809_v58 = vcombine.low %v285_v46, %v289_v47 }
  0xae   : > { %1380 = vmatmul.mubr.bf16.gmra.mrb[24].mxu1 %v1815_v59  ;;  %1282 = vmatprep.mubr.bf16.mxu0 %v1822_v60  ;;  %v1811_v59 = vcombine.low %v286_v48, %v290_v49  ;;  %v1818_v60 = vcombine.high %v293_v54, %v297_v55 }
  0xaf   : > { %1387 = vmatprep.mubr.bf16.mxu1 %v1824_v61  ;;  %v1820_v61 = vcombine.high %v294_v56, %v298_v57 }
  0xb5   : > { %1283 = vmatmul.mubr.bf16.gmra.mrb[28].mxu0 %v1821_v2  ;;  %v1817_v2 = vcombine.low %v293_v54, %v297_v55 }
  0xb6   : > { %1388 = vmatmul.mubr.bf16.gmra.mrb[28].mxu1 %v1823_v3  ;;  %1290 = vmatprep.mubr.bf16.mxu0 %v1830_v4  ;;  %v1819_v3 = vcombine.low %v294_v56, %v298_v57  ;;  %v1826_v4 = vcombine.high %v301_v62, %v305_v63 }
  0xb7   : > { %1395 = vmatprep.mubr.bf16.mxu1 %v1832_v5  ;;  %v1828_v5 = vcombine.high %v302_v0, %v306_v1 }
  0xbd   : > { %1291 = vmatmul.mubr.bf16.gmra.mrb[32].mxu0 %v1829_v10  ;;  %v1825_v10 = vcombine.low %v301_v62, %v305_v63 }
  0xbe   : > { %1396 = vmatmul.mubr.bf16.gmra.mrb[32].mxu1 %v1831_v11  ;;  %1436 = vmatprep.mubr.bf16.mxu0 %v1770_v12  ;;  %v1827_v11 = vcombine.low %v302_v0, %v306_v1  ;;  %v1834_v12 = vcombine.high %v309_v6, %v313_v7 }
  0xbf   : > { %1541 = vmatprep.mubr.bf16.mxu1 %v1772_v13  ;;  %v1836_v13 = vcombine.high %v310_v8, %v314_v9 }
  0xc5   : > { %1437 = vmatmul.mubr.bf16.vlgmr.msra.gmra.mrb[36].mxu0 %v1769_v18  ;;  %v2744_v18 = vld [vmem:[%s2897_s2] ss:$0 sm:$0xff] }
  0xc6   : > { %1542 = vmatmul.mubr.bf16.vlgmr.msra.gmra.mrb[36].mxu1 %v1771_v19  ;;  %1444 = vmatprep.mubr.bf16.mxu0 %v1778_v20 }
  0xc7   : > { %1549 = vmatprep.mubr.bf16.mxu1 %v1780_v21 }
  0xcd   : > { %1445 = vmatmul.mubr.bf16.gmra.mrb[40].mxu0 %v1777_v26 }
  0xce   : > { %1550 = vmatmul.mubr.bf16.gmra.mrb[40].mxu1 %v1779_v27  ;;  %1452 = vmatprep.mubr.bf16.mxu0 %v1786_v28 }
  0xcf   : > { %1557 = vmatprep.mubr.bf16.mxu1 %v1788_v29 }
  0xd5   : > { %1453 = vmatmul.mubr.bf16.gmra.mrb[44].mxu0 %v1785_v34 }
  0xd6   : > { %1558 = vmatmul.mubr.bf16.gmra.mrb[44].mxu1 %v1787_v35  ;;  %1460 = vmatprep.mubr.bf16.mxu0 %v1794_v36 }
  0xd7   : > { %1565 = vmatprep.mubr.bf16.mxu1 %v1796_v37 }
  0xdd   : > { %1461 = vmatmul.mubr.bf16.gmra.mrb[48].mxu0 %v1793_v42 }
  0xde   : > { %1566 = vmatmul.mubr.bf16.gmra.mrb[48].mxu1 %v1795_v43  ;;  %1468 = vmatprep.mubr.bf16.mxu0 %v1802_v44 }
  0xdf   : > { %1573 = vmatprep.mubr.bf16.mxu1 %v1804_v45 }
  0xe5   : > { %1469 = vmatmul.mubr.bf16.gmra.mrb[52].mxu0 %v1801_v50 }
  0xe6   : > { %1574 = vmatmul.mubr.bf16.gmra.mrb[52].mxu1 %v1803_v51  ;;  %1476 = vmatprep.mubr.bf16.mxu0 %v1810_v52 }
  0xe7   : > { %1581 = vmatprep.mubr.bf16.mxu1 %v1812_v53 }
  0xed   : > { %1477 = vmatmul.mubr.bf16.gmra.mrb[56].mxu0 %v1809_v58 }
  0xee   : > { %1582 = vmatmul.mubr.bf16.gmra.mrb[56].mxu1 %v1811_v59  ;;  %1484 = vmatprep.mubr.bf16.mxu0 %v1818_v60 }
  0xef   : > { %1589 = vmatprep.mubr.bf16.mxu1 %v1820_v61 }
  0xf5   : > { %1485 = vmatmul.mubr.bf16.gmra.mrb[60].mxu0 %v1817_v2 }
  0xf6   : > { %1590 = vmatmul.mubr.bf16.gmra.mrb[60].mxu1 %v1819_v3  ;;  %1492 = vmatprep.mubr.bf16.mxu0 %v1826_v4 }
  0xf7   : > { %1597 = vmatprep.mubr.bf16.mxu1 %v1828_v5 }
  0xfd   : > { %1493 = vmatmul.mubr.bf16.gmra.mrb[64].mxu0 %v1825_v10 }
  0xfe   : > { %1598 = vmatmul.mubr.bf16.gmra.mrb[64].mxu1 %v1827_v11  ;;  %1500 = vmatprep.mubr.bf16.mxu0 %v1834_v12 }
  0xff   : > { %1605 = vmatprep.mubr.bf16.mxu1 %v1836_v13 }
 0x105   : > { %1501 = vmatmul.mubr.bf16.gmra.mrb[68].mxu0 %v1833_v14 }
 0x106   : > { %1606 = vmatmul.mubr.bf16.gmra.mrb[68].mxu1 %v1835_v15 }
 0x150   : > { %v1924_v16 = vpop.f32.mrb[0].mxu0 }
 0x151   : > { %v1994_v17 = vpop.f32.mrb[0].mxu1  ;;  %v1925_v19 = vpop.f32.mrb[1].mxu0 }
 0x152   : > { %v1926_v20 = vadd.f32 %v1925_v19, %v1924_v16  ;;  %v1995_v21 = vpop.f32.mrb[1].mxu1  ;;  %v1927_v22 = vpop.f32.mrb[2].mxu0 }
 0x153   : > { %v1996_v23 = vadd.f32 %v1995_v21, %v1994_v17  ;;  %v1997_v24 = vpop.f32.mrb[2].mxu1  ;;  %v1928_v25 = vpop.f32.mrb[3].mxu0 }
 0x154   : > { %v1229_v26 = vadd.f32 %v1926_v20, %v2744_v18  ;;  %v1929_v27 = vadd.f32 %v1928_v25, %v1927_v22  ;;  %v1998_v28 = vpop.f32.mrb[3].mxu1 }
 0x155   : > { %v1999_v29 = vadd.f32 %v1998_v28, %v1997_v24 }
 0x156   : > { %v2747_v30 = vadd.f32 %v1996_v23, %v1229_v26  ;;  %v1232_v31 = vadd.f32 %v1929_v27, %v2744_v18 }
 0x158   : > { %v2750_v32 = vadd.f32 %v1999_v29, %v1232_v31  ;;  %v1930_v33 = vpop.f32.mrb[4].mxu0 }
 0x159   : > { %v2000_v34 = vpop.f32.mrb[4].mxu1  ;;  %v1931_v35 = vpop.f32.mrb[5].mxu0 }
 0x15a   : > { %v1932_v36 = vadd.f32 %v1931_v35, %v1930_v33  ;;  %v2001_v37 = vpop.f32.mrb[5].mxu1  ;;  %v1933_v38 = vpop.f32.mrb[6].mxu0 }
 0x15b   : > { %v2002_v39 = vadd.f32 %v2001_v37, %v2000_v34  ;;  %v2003_v40 = vpop.f32.mrb[6].mxu1  ;;  %v1934_v41 = vpop.f32.mrb[7].mxu0 }
 0x15c   : > { %v1237_v42 = vadd.f32 %v1932_v36, %v2744_v18  ;;  %v1935_v43 = vadd.f32 %v1934_v41, %v1933_v38  ;;  %v2004_v44 = vpop.f32.mrb[7].mxu1 }
 0x15d   : > { %v2005_v45 = vadd.f32 %v2004_v44, %v2003_v40 }
 0x15e   : > { %v2753_v46 = vadd.f32 %v2002_v39, %v1237_v42  ;;  %v1240_v47 = vadd.f32 %v1935_v43, %v2744_v18 }
 0x160   : > { %v2756_v48 = vadd.f32 %v2005_v45, %v1240_v47  ;;  %v1936_v49 = vpop.f32.mrb[8].mxu0 }
 0x161   : > { %v2006_v50 = vpop.f32.mrb[8].mxu1  ;;  %v1937_v51 = vpop.f32.mrb[9].mxu0 }
 0x162   : > { %v1938_v52 = vadd.f32 %v1937_v51, %v1936_v49  ;;  %v2007_v53 = vpop.f32.mrb[9].mxu1  ;;  %v1939_v54 = vpop.f32.mrb[10].mxu0 }
 0x163   : > { %v2008_v55 = vadd.f32 %v2007_v53, %v2006_v50  ;;  %v2009_v56 = vpop.f32.mrb[10].mxu1  ;;  %v1940_v57 = vpop.f32.mrb[11].mxu0 }
 0x164   : > { %v1245_v58 = vadd.f32 %v1938_v52, %v2744_v18  ;;  %v1941_v59 = vadd.f32 %v1940_v57, %v1939_v54  ;;  %v2010_v60 = vpop.f32.mrb[11].mxu1 }
 0x165   : > { %v2011_v61 = vadd.f32 %v2010_v60, %v2009_v56 }
 0x166   : > { %v2759_v62 = vadd.f32 %v2008_v55, %v1245_v58  ;;  %v1248_v63 = vadd.f32 %v1941_v59, %v2744_v18 }
 0x168   : > { %v2762_v0 = vadd.f32 %v2011_v61, %v1248_v63  ;;  %v1942_v1 = vpop.f32.mrb[12].mxu0 }
 0x169   : > { %v2012_v2 = vpop.f32.mrb[12].mxu1  ;;  %v1943_v3 = vpop.f32.mrb[13].mxu0 }
 0x16a   : > { %v1944_v4 = vadd.f32 %v1943_v3, %v1942_v1  ;;  %v2013_v5 = vpop.f32.mrb[13].mxu1  ;;  %v1945_v6 = vpop.f32.mrb[14].mxu0 }
 0x16b   : > { %v2014_v7 = vadd.f32 %v2013_v5, %v2012_v2  ;;  %v2015_v8 = vpop.f32.mrb[14].mxu1  ;;  %v1946_v9 = vpop.f32.mrb[15].mxu0 }
 0x16c   : > { %v1253_v10 = vadd.f32 %v1944_v4, %v2744_v18  ;;  %v1947_v11 = vadd.f32 %v1946_v9, %v1945_v6  ;;  %v2016_v12 = vpop.f32.mrb[15].mxu1 }
 0x16d   : > { %v2017_v13 = vadd.f32 %v2016_v12, %v2015_v8 }
 0x16e   : > { %v2765_v14 = vadd.f32 %v2014_v7, %v1253_v10  ;;  %v1256_v15 = vadd.f32 %v1947_v11, %v2744_v18 }
 0x170   : > { %v2768_v16 = vadd.f32 %v2017_v13, %v1256_v15  ;;  %v1948_v17 = vpop.f32.mrb[16].mxu0 }
 0x171   : > { %v2018_v19 = vpop.f32.mrb[16].mxu1  ;;  %v1949_v20 = vpop.f32.mrb[17].mxu0 }
 0x172   : > { %v1950_v21 = vadd.f32 %v1949_v20, %v1948_v17  ;;  %v2019_v22 = vpop.f32.mrb[17].mxu1  ;;  %v1951_v23 = vpop.f32.mrb[18].mxu0 }
 0x173   : > { %v2020_v24 = vadd.f32 %v2019_v22, %v2018_v19  ;;  %v2021_v25 = vpop.f32.mrb[18].mxu1  ;;  %v1952_v26 = vpop.f32.mrb[19].mxu0 }
 0x174   : > { %v1261_v27 = vadd.f32 %v1950_v21, %v2744_v18  ;;  %v1953_v28 = vadd.f32 %v1952_v26, %v1951_v23  ;;  %v2022_v29 = vpop.f32.mrb[19].mxu1 }
 0x175   : > { %v2023_v31 = vadd.f32 %v2022_v29, %v2021_v25 }
 0x176   : > { %v2771_v33 = vadd.f32 %v2020_v24, %v1261_v27  ;;  %v1264_v34 = vadd.f32 %v1953_v28, %v2744_v18 }
 0x178   : > { %v2774_v35 = vadd.f32 %v2023_v31, %v1264_v34  ;;  %v1954_v36 = vpop.f32.mrb[20].mxu0 }
 0x179   : > { %v2024_v37 = vpop.f32.mrb[20].mxu1  ;;  %v1955_v38 = vpop.f32.mrb[21].mxu0 }
 0x17a   : > { %v1956_v39 = vadd.f32 %v1955_v38, %v1954_v36  ;;  %v2025_v40 = vpop.f32.mrb[21].mxu1  ;;  %v1957_v41 = vpop.f32.mrb[22].mxu0 }
 0x17b   : > { %v2026_v42 = vadd.f32 %v2025_v40, %v2024_v37  ;;  %v2027_v43 = vpop.f32.mrb[22].mxu1  ;;  %v1958_v44 = vpop.f32.mrb[23].mxu0 }
 0x17c   : > { %v1269_v45 = vadd.f32 %v1956_v39, %v2744_v18  ;;  %v1959_v47 = vadd.f32 %v1958_v44, %v1957_v41  ;;  %v2028_v49 = vpop.f32.mrb[23].mxu1 }
 0x17d   : > { %v2029_v50 = vadd.f32 %v2028_v49, %v2027_v43 }
 0x17e   : > { %v2777_v51 = vadd.f32 %v2026_v42, %v1269_v45  ;;  %v1272_v52 = vadd.f32 %v1959_v47, %v2744_v18 }
 0x180   : > { %v2780_v53 = vadd.f32 %v2029_v50, %v1272_v52  ;;  %v1960_v54 = vpop.f32.mrb[24].mxu0 }
 0x181   : > { %v2030_v55 = vpop.f32.mrb[24].mxu1  ;;  %v1961_v56 = vpop.f32.mrb[25].mxu0 }
 0x182   : > { %v1962_v57 = vadd.f32 %v1961_v56, %v1960_v54  ;;  %v2031_v58 = vpop.f32.mrb[25].mxu1  ;;  %v1963_v59 = vpop.f32.mrb[26].mxu0 }
 0x183   : > { %v2032_v60 = vadd.f32 %v2031_v58, %v2030_v55  ;;  %v2033_v61 = vpop.f32.mrb[26].mxu1  ;;  %v1964_v63 = vpop.f32.mrb[27].mxu0 }
 0x184   : > { %v1277_v1 = vadd.f32 %v1962_v57, %v2744_v18  ;;  %v1965_v2 = vadd.f32 %v1964_v63, %v1963_v59  ;;  %v2034_v3 = vpop.f32.mrb[27].mxu1 }
 0x185   : > { %v2035_v4 = vadd.f32 %v2034_v3, %v2033_v61 }
 0x186   : > { %v2783_v5 = vadd.f32 %v2032_v60, %v1277_v1  ;;  %v1280_v6 = vadd.f32 %v1965_v2, %v2744_v18 }
 0x188   : > { %v2786_v7 = vadd.f32 %v2035_v4, %v1280_v6  ;;  %v1966_v8 = vpop.f32.mrb[28].mxu0 }
 0x189   : > { %v2036_v9 = vpop.f32.mrb[28].mxu1  ;;  %v1967_v10 = vpop.f32.mrb[29].mxu0 }
 0x18a   : > { %v1968_v11 = vadd.f32 %v1967_v10, %v1966_v8  ;;  %v2037_v12 = vpop.f32.mrb[29].mxu1  ;;  %v1969_v13 = vpop.f32.mrb[30].mxu0 }
 0x18b   : > { %v2038_v15 = vadd.f32 %v2037_v12, %v2036_v9  ;;  %v2039_v17 = vpop.f32.mrb[30].mxu1  ;;  %v1970_v19 = vpop.f32.mrb[31].mxu0 }
 0x18c   : > { %v1285_v20 = vadd.f32 %v1968_v11, %v2744_v18  ;;  %v1971_v21 = vadd.f32 %v1970_v19, %v1969_v13  ;;  %v2040_v22 = vpop.f32.mrb[31].mxu1 }
 0x18d   : > { %v2041_v23 = vadd.f32 %v2040_v22, %v2039_v17 }
 0x18e   : > { %v2789_v24 = vadd.f32 %v2038_v15, %v1285_v20  ;;  %v1288_v25 = vadd.f32 %v1971_v21, %v2744_v18 }
 0x190   : > { %v2792_v26 = vadd.f32 %v2041_v23, %v1288_v25  ;;  %v1972_v27 = vpop.f32.mrb[32].mxu0 }
 0x191   : > { %v2042_v28 = vpop.f32.mrb[32].mxu1  ;;  %v1973_v29 = vpop.f32.mrb[33].mxu0 }
 0x192   : > { %v1974_v31 = vadd.f32 %v1973_v29, %v1972_v27  ;;  %v2043_v34 = vpop.f32.mrb[33].mxu1  ;;  %v1975_v36 = vpop.f32.mrb[34].mxu0 }
 0x193   : > { %v2044_v37 = vadd.f32 %v2043_v34, %v2042_v28  ;;  %v2045_v38 = vpop.f32.mrb[34].mxu1  ;;  %v1976_v39 = vpop.f32.mrb[35].mxu0 }
 0x194   : > { %v1293_v40 = vadd.f32 %v1974_v31, %v2744_v18  ;;  %v1977_v41 = vadd.f32 %v1976_v39, %v1975_v36  ;;  %v2046_v42 = vpop.f32.mrb[35].mxu1 }
 0x195   : > { %v2047_v43 = vadd.f32 %v2046_v42, %v2045_v38 }
 0x196   : > { %v2795_v44 = vadd.f32 %v2044_v37, %v1293_v40  ;;  %v1296_v45 = vadd.f32 %v1977_v41, %v2744_v18 }
 0x198   : > { %v2798_v47 = vadd.f32 %v2047_v43, %v1296_v45  ;;  %v2064_v49 = vpop.f32.mrb[36].mxu0 }
 0x199   : > { %v2134_v50 = vpop.f32.mrb[36].mxu1  ;;  %v2065_v52 = vpop.f32.mrb[37].mxu0 }
 0x19a   : > { %v2066_v54 = vadd.f32 %v2065_v52, %v2064_v49  ;;  %v2135_v55 = vpop.f32.mrb[37].mxu1  ;;  %v2067_v56 = vpop.f32.mrb[38].mxu0 }
 0x19b   : > { %v2136_v57 = vadd.f32 %v2135_v55, %v2134_v50  ;;  %v2137_v58 = vpop.f32.mrb[38].mxu1  ;;  %v2068_v59 = vpop.f32.mrb[39].mxu0 }
 0x19c   : > { %v1439_v60 = vadd.f32 %v2066_v54, %v2747_v30  ;;  %v2069_v61 = vadd.f32 %v2068_v59, %v2067_v56  ;;  %v2138_v63 = vpop.f32.mrb[39].mxu1 }
 0x19d   : > { %v2139_v1 = vadd.f32 %v2138_v63, %v2137_v58 }
 0x19e   : > { %v1544_v2 = vadd.f32 %v2136_v57, %v1439_v60  ;;  %v1442_v18 = vadd.f32 %v2069_v61, %v2750_v32 }
 0x1a0   : > { %1614 = vst [vmem:[%s2803_s7] sm:$0xff] %v1544_v2  ;;  %v1547_v3 = vadd.f32 %v2139_v1, %v1442_v18  ;;  %v2070_v4 = vpop.f32.mrb[40].mxu0 }
 0x1a1   : > { %v2140_v6 = vpop.f32.mrb[40].mxu1  ;;  %v2071_v8 = vpop.f32.mrb[41].mxu0 }
 0x1a2   : > { %1615 = vst [vmem:[%s2803_s7 + $0x8] sm:$0xff] %v1547_v3  ;;  %v2072_v9 = vadd.f32 %v2071_v8, %v2070_v4  ;;  %v2141_v10 = vpop.f32.mrb[41].mxu1  ;;  %v2073_v30 = vpop.f32.mrb[42].mxu0 }
 0x1a3   : > { %v2142_v11 = vadd.f32 %v2141_v10, %v2140_v6  ;;  %v2143_v12 = vpop.f32.mrb[42].mxu1  ;;  %v2074_v13 = vpop.f32.mrb[43].mxu0 }
 0x1a4   : > { %v1447_v32 = vadd.f32 %v2072_v9, %v2753_v46  ;;  %v2075_v15 = vadd.f32 %v2074_v13, %v2073_v30  ;;  %v2144_v17 = vpop.f32.mrb[43].mxu1 }
 0x1a5   : > { %v2145_v19 = vadd.f32 %v2144_v17, %v2143_v12 }
 0x1a6   : > { %v1552_v20 = vadd.f32 %v2142_v11, %v1447_v32  ;;  %v1450_v21 = vadd.f32 %v2075_v15, %v2756_v48 }
 0x1a8   : > { %1616 = vst [vmem:[%s2803_s7 + $0x10] sm:$0xff] %v1552_v20  ;;  %v1555_v22 = vadd.f32 %v2145_v19, %v1450_v21  ;;  %v2076_v23 = vpop.f32.mrb[44].mxu0 }
 0x1a9   : > { %v2146_v25 = vpop.f32.mrb[44].mxu1  ;;  %v2077_v27 = vpop.f32.mrb[45].mxu0 }
 0x1aa   : > { %1617 = vst [vmem:[%s2803_s7 + $0x18] sm:$0xff] %v1555_v22  ;;  %v2078_v28 = vadd.f32 %v2077_v27, %v2076_v23  ;;  %v2147_v29 = vpop.f32.mrb[45].mxu1  ;;  %v2079_v31 = vpop.f32.mrb[46].mxu0 }
 0x1ab   : > { %v2148_v34 = vadd.f32 %v2147_v29, %v2146_v25  ;;  %v2149_v36 = vpop.f32.mrb[46].mxu1  ;;  %v2080_v46 = vpop.f32.mrb[47].mxu0 }
 0x1ac   : > { %v1455_v37 = vadd.f32 %v2078_v28, %v2759_v62  ;;  %v2081_v38 = vadd.f32 %v2080_v46, %v2079_v31  ;;  %v2150_v39 = vpop.f32.mrb[47].mxu1 }
 0x1ad   : > { %v2151_v40 = vadd.f32 %v2150_v39, %v2149_v36 }
 0x1ae   : > { %v1560_v48 = vadd.f32 %v2148_v34, %v1455_v37  ;;  %v1458_v41 = vadd.f32 %v2081_v38, %v2762_v0 }
 0x1b0   : > { %1618 = vst [vmem:[%s2803_s7 + $0x20] sm:$0xff] %v1560_v48  ;;  %v1563_v42 = vadd.f32 %v2151_v40, %v1458_v41  ;;  %v2082_v43 = vpop.f32.mrb[48].mxu0 }
 0x1b1   : > { %v2152_v45 = vpop.f32.mrb[48].mxu1  ;;  %v2083_v49 = vpop.f32.mrb[49].mxu0 }
 0x1b2   : > { %1619 = vst [vmem:[%s2803_s7 + $0x28] sm:$0xff] %v1563_v42  ;;  %v2084_v50 = vadd.f32 %v2083_v49, %v2082_v43  ;;  %v2153_v52 = vpop.f32.mrb[49].mxu1  ;;  %v2085_v54 = vpop.f32.mrb[50].mxu0 }
 0x1b3   : > { %v2154_v55 = vadd.f32 %v2153_v52, %v2152_v45  ;;  %v2155_v56 = vpop.f32.mrb[50].mxu1  ;;  %v2086_v62 = vpop.f32.mrb[51].mxu0 }
 0x1b4   : > { %v1463_v57 = vadd.f32 %v2084_v50, %v2765_v14  ;;  %v2087_v58 = vadd.f32 %v2086_v62, %v2085_v54  ;;  %v2156_v59 = vpop.f32.mrb[51].mxu1 }
 0x1b5   : > { %v2157_v60 = vadd.f32 %v2156_v59, %v2155_v56 }
 0x1b6   : > { %v1568_v0 = vadd.f32 %v2154_v55, %v1463_v57  ;;  %v1466_v61 = vadd.f32 %v2087_v58, %v2768_v16 }
 0x1b8   : > { %1620 = vst [vmem:[%s2803_s7 + $0x30] sm:$0xff] %v1568_v0  ;;  %v1571_v63 = vadd.f32 %v2157_v60, %v1466_v61  ;;  %v2088_v1 = vpop.f32.mrb[52].mxu0 }
 0x1b9   : > { %v2158_v2 = vpop.f32.mrb[52].mxu1  ;;  %v2089_v18 = vpop.f32.mrb[53].mxu0 }
 0x1ba   : > { %1621 = vst [vmem:[%s2803_s7 + $0x38] sm:$0xff] %v1571_v63  ;;  %v2090_v3 = vadd.f32 %v2089_v18, %v2088_v1  ;;  %v2159_v4 = vpop.f32.mrb[53].mxu1  ;;  %v2091_v6 = vpop.f32.mrb[54].mxu0 }
 0x1bb   : > { %v2160_v8 = vadd.f32 %v2159_v4, %v2158_v2  ;;  %v2161_v9 = vpop.f32.mrb[54].mxu1  ;;  %v2092_v14 = vpop.f32.mrb[55].mxu0 }
 0x1bc   : > { %v1471_v10 = vadd.f32 %v2090_v3, %v2771_v33  ;;  %v2093_v30 = vadd.f32 %v2092_v14, %v2091_v6  ;;  %v2162_v11 = vpop.f32.mrb[55].mxu1 }
 0x1bd   : > { %v2163_v12 = vadd.f32 %v2162_v11, %v2161_v9 }
 0x1be   : > { %v1576_v16 = vadd.f32 %v2160_v8, %v1471_v10  ;;  %v1474_v13 = vadd.f32 %v2093_v30, %v2774_v35 }
 0x1c0   : > { %1622 = vst [vmem:[%s2803_s7 + $0x40] sm:$0xff] %v1576_v16  ;;  %v1579_v32 = vadd.f32 %v2163_v12, %v1474_v13  ;;  %v2094_v15 = vpop.f32.mrb[56].mxu0 }
 0x1c1   : > { %v2164_v17 = vpop.f32.mrb[56].mxu1  ;;  %v2095_v19 = vpop.f32.mrb[57].mxu0 }
 0x1c2   : > { %1623 = vst [vmem:[%s2803_s7 + $0x48] sm:$0xff] %v1579_v32  ;;  %v2096_v20 = vadd.f32 %v2095_v19, %v2094_v15  ;;  %v2165_v21 = vpop.f32.mrb[57].mxu1  ;;  %v2097_v22 = vpop.f32.mrb[58].mxu0 }
 0x1c3   : > { %v2166_v23 = vadd.f32 %v2165_v21, %v2164_v17  ;;  %v2167_v25 = vpop.f32.mrb[58].mxu1  ;;  %v2098_v33 = vpop.f32.mrb[59].mxu0 }
 0x1c4   : > { %v1479_v27 = vadd.f32 %v2096_v20, %v2777_v51  ;;  %v2099_v28 = vadd.f32 %v2098_v33, %v2097_v22  ;;  %v2168_v29 = vpop.f32.mrb[59].mxu1 }
 0x1c5   : > { %v2169_v31 = vadd.f32 %v2168_v29, %v2167_v25 }
 0x1c6   : > { %v1584_v35 = vadd.f32 %v2166_v23, %v1479_v27  ;;  %v1482_v34 = vadd.f32 %v2099_v28, %v2780_v53 }
 0x1c8   : > { %1624 = vst [vmem:[%s2803_s7 + $0x50] sm:$0xff] %v1584_v35  ;;  %v1587_v36 = vadd.f32 %v2169_v31, %v1482_v34  ;;  %v2100_v46 = vpop.f32.mrb[60].mxu0 }
 0x1c9   : > { %v2170_v37 = vpop.f32.mrb[60].mxu1  ;;  %v2101_v38 = vpop.f32.mrb[61].mxu0 }
 0x1ca   : > { %1625 = vst [vmem:[%s2803_s7 + $0x58] sm:$0xff] %v1587_v36  ;;  %v2102_v39 = vadd.f32 %v2101_v38, %v2100_v46  ;;  %v2171_v40 = vpop.f32.mrb[61].mxu1  ;;  %v2103_v48 = vpop.f32.mrb[62].mxu0 }
 0x1cb   : > { %v2172_v41 = vadd.f32 %v2171_v40, %v2170_v37  ;;  %v2173_v42 = vpop.f32.mrb[62].mxu1  ;;  %v2104_v51 = vpop.f32.mrb[63].mxu0 }
 0x1cc   : > { %v1487_v43 = vadd.f32 %v2102_v39, %v2783_v5  ;;  %v2105_v45 = vadd.f32 %v2104_v51, %v2103_v48  ;;  %v2174_v49 = vpop.f32.mrb[63].mxu1 }
 0x1cd   : > { %v2175_v50 = vadd.f32 %v2174_v49, %v2173_v42 }
 0x1ce   : > { %v1592_v53 = vadd.f32 %v2172_v41, %v1487_v43  ;;  %v1490_v52 = vadd.f32 %v2105_v45, %v2786_v7 }
 0x1d0   : > { %1626 = vst [vmem:[%s2803_s7 + $0x60] sm:$0xff] %v1592_v53  ;;  %v1595_v54 = vadd.f32 %v2175_v50, %v1490_v52  ;;  %v2106_v55 = vpop.f32.mrb[64].mxu0 }
 0x1d1   : > { %v2176_v56 = vpop.f32.mrb[64].mxu1  ;;  %v2107_v62 = vpop.f32.mrb[65].mxu0 }
 0x1d2   : > { %1627 = vst [vmem:[%s2803_s7 + $0x68] sm:$0xff] %v1595_v54  ;;  %v2108_v57 = vadd.f32 %v2107_v62, %v2106_v55  ;;  %v2177_v58 = vpop.f32.mrb[65].mxu1  ;;  %v2109_v59 = vpop.f32.mrb[66].mxu0 }
 0x1d3   : > { %v2178_v60 = vadd.f32 %v2177_v58, %v2176_v56  ;;  %v2179_v0 = vpop.f32.mrb[66].mxu1  ;;  %v2110_v5 = vpop.f32.mrb[67].mxu0 }
 0x1d4   : > { %v1495_v61 = vadd.f32 %v2108_v57, %v2789_v24  ;;  %v2111_v63 = vadd.f32 %v2110_v5, %v2109_v59  ;;  %v2180_v1 = vpop.f32.mrb[67].mxu1 }
 0x1d5   : > { %v2181_v7 = vadd.f32 %v2180_v1, %v2179_v0 }
 0x1d6   : > { %v1600_v2 = vadd.f32 %v2178_v60, %v1495_v61  ;;  %v1498_v18 = vadd.f32 %v2111_v63, %v2792_v26 }
 0x1d8   : > { %1628 = vst [vmem:[%s2803_s7 + $0x70] sm:$0xff] %v1600_v2  ;;  %v1603_v3 = vadd.f32 %v2181_v7, %v1498_v18  ;;  %v2112_v4 = vpop.f32.mrb[68].mxu0 }
 0x1d9   : > { %v2182_v6 = vpop.f32.mrb[68].mxu1  ;;  %v2113_v8 = vpop.f32.mrb[69].mxu0 }
 0x1da   : > { %1629 = vst [vmem:[%s2803_s7 + $0x78] sm:$0xff] %v1603_v3  ;;  %v2114_v9 = vadd.f32 %v2113_v8, %v2112_v4  ;;  %v2183_v14 = vpop.f32.mrb[69].mxu1  ;;  %v2115_v10 = vpop.f32.mrb[70].mxu0 }
 0x1db   : > { %v2184_v24 = vadd.f32 %v2183_v14, %v2182_v6  ;;  %v2185_v30 = vpop.f32.mrb[70].mxu1  ;;  %v2116_v11 = vpop.f32.mrb[71].mxu0 }
 0x1dc   : > { %v1503_v26 = vadd.f32 %v2114_v9, %v2795_v44  ;;  %v2117_v12 = vadd.f32 %v2116_v11, %v2115_v10  ;;  %v2186_v16 = vpop.f32.mrb[71].mxu1 }
 0x1dd   : > { %v2187_v13 = vadd.f32 %v2186_v16, %v2185_v30 }
 0x1de   : > { %v1608_v32 = vadd.f32 %v2184_v24, %v1503_v26  ;;  %v1506_v15 = vadd.f32 %v2117_v12, %v2798_v47 }
 0x1e0   : > { %1630 = vst [vmem:[%s2803_s7 + $0x80] sm:$0xff] %v1608_v32  ;;  %v1611_v17 = vadd.f32 %v2187_v13, %v1506_v15 }
 0x1e2   : > { %1631 = vst [vmem:[%s2803_s7 + $0x88] sm:$0xff] %v1611_v17 }
 0x1e3   : > { %2405 = shalt.err (!%p2402_p5)
}
 0x1e4   : > { %s2406_s30 = scalar_lea.hbm %s2842_s6, 2304  ;;  %s2410_s20 = scalar_lea.hbm %s2898_s3, 4608 }
 0x1e5   : > { %p2407_p9 = scmp.ne.s32.totalorder %s2842_s6, %s2406_s30  ;;  %p2411_p3 = scmp.lt.u32.totalorder %s2842_s6, %s2898_s3 }
 0x1e6   : > { %p2412_p7 = scmp.lt.u32.totalorder %s2410_s20, %s2406_s30  ;;  %p2414_p4 = scmp.lt.u32.totalorder %s2406_s30, %s2842_s6 }
 0x1e7   : > { %p2408_p1 = pnand %p2407_p9, %p2601_p10 }
 0x1e8   : > { %p2413_p11 = por %p2412_p7, %p2411_p3 }
 0x1e9   : > { %p2409_p2 = pneg %p2408_p1 }
 0x1ea   : > { %p2415_p6 = por %p2414_p4, %p2413_p11 }
 0x1ec   : > { %p2416_p8 = pnand %p2415_p6, %p2409_p2 }
 0x1ee   : > { %2419 = shalt.err (!%p2416_p8)
}
 0x1ef   : > { %s2487_s7 = smov 128   ;;  %s2488_s8 = smov 8  }
 0x1f0   : > { %2197 = dma.vmem_to_hbm [thread:$0]  (%p2601_p10), %s2844_s10, 2304, %s2842_s6, %s1633_s15, %s2487_s7, %s2487_s7, %s2488_s8  }
 0x1f1 PF: > { %s1662_s11 = sand.u32 1, %s2458_s12   ;;  %p2915_p12 = scmp.ne.s32.totalorder %s2906_s23, 0 }
 0x1f2   : > { %p2916_p13 = scmp.ge.s32.totalorder %s2478_s17, 2  ;;  %s1663_s27 = scalar_lea.sflag [#allocation4], %s1662_s11 }
 0x1f4   : > { %p2208_p0 = pnand %p2916_p13, %p2915_p12 }
 0x1f6   : > { %2453 = dma.done.wait (!%p2208_p0), %s1663_s27, 2304  }
 0x1f7   : > { %2455 = vsyncadd (!%p2208_p0), %s1663_s27, 4294964992  ;;  %s20_s17 = sadd.s32 1, %s2478_s17   ;;  %s2917_s12 = smov %s2462_s13 }
 0x1f8   : > { %p17_p5 = scmp.ge.s32.totalorder %s20_s17, 4   ;;  %s2918_s13 = smov %s2466_s14 }
 0x1f9   : > { %s2919_s14 = smov %s2610_s5  ;;  %s2920_s15 = smov %s2474_s16 }
 0x1fa   : > { %s2921_s16 = smov %s2923_s28  ;;  %19 = sbr.rel (!%p17_p5) target bundleno = 7 (0x7), region = 85 }
 0x201   :  { %1668 = vsyncpa [#allocation3], 1 }
 0x202   :  { %1670 = vsyncpa [#allocation3 + $0x1], 1 }
 0x203   :  { %1671 = vsyncpa [#allocation6], 1 }
 0x204   :  { %1672 = vsyncpa [#allocation4], 1 }
 0x205   :  { %1674 = vsyncpa [#allocation4 + $0x1], 1 }

</bundles_post_ra>
